<compile_context>
chip_gen: v7x
topology: tpu7x:2x2x1
jax: 0.10.0
libtpu: 0.0.40
codegen_flags: <defaults>
</compile_context>

<pallas_src>
import jax
import jax.numpy as jnp
from jax.experimental import pallas as pl
from jax.experimental.pallas import tpu as pltpu


def _replica_tile_kernel(x_ref, w_ref, b_ref, o_ref, acc_ref):
    """One (batch-tile, out-tile) of one "device replica": y = relu(x @ W + b).

    Grid = (m, n, k); k is the contraction axis (innermost, "arbitrary"), so the f32
    accumulator lives in VMEM scratch and the bf16 output is written exactly once.
    """
    k = pl.program_id(2)

    @pl.when(k == 0)
    def _():
        acc_ref[...] = jnp.zeros_like(acc_ref)

    # bf16 x bf16 -> f32 accumulate on the MXU.
    acc_ref[...] += jnp.dot(x_ref[...], w_ref[...], preferred_element_type=jnp.float32)

    @pl.when(k == pl.num_programs(2) - 1)
    def _():
        y = acc_ref[...] + b_ref[...]              # f32 bias broadcast over tile rows
        o_ref[...] = jnp.maximum(y, 0.0).astype(o_ref.dtype)


def _round_up(x, m):
    return ((x + m - 1) // m) * m


def _vmem_budget_bytes():
    """Generation-aware scoped-VMEM budget."""
    cap = None
    try:
        cap = getattr(pltpu.get_tpu_info(), "vmem_capacity_bytes", None)
    except Exception:  # interpret mode / unknown hardware
        cap = None
    if cap is None or cap <= 64 * 1024 * 1024:
        # v7x-style: 64 MiB per TensorCore (each TC holds its own buffers under
        # "parallel" megacore sharding) -> leave headroom.  Also the safe fallback.
        return 48 * 1024 * 1024
    # v5e / v6e: 128 MiB physical; the default scoped limit (16/32 MiB) wastes 3/4 of it.
    return 100 * 1024 * 1024


def _pick_feature_tile(dim):
    # v6e/v7x MXUs are 2x256^2: prefer 256-multiples for the output / contraction tiles.
    for c in (1024, 512, 256):
        if dim % c == 0:
            return c
    return dim  # full (128-multiple) dim; optimal on v5e's 4x128^2 MXU anyway


def _vmem_estimate(tile_m, tile_k, tile_n):
    x_buf = 2 * tile_m * tile_k * 2      # bf16 x, double-buffered (streamed)
    w_buf = 2 * tile_k * tile_n * 2      # bf16 W, double-buffered (streamed over k/n)
    b_buf = 2 * 8 * tile_n * 4           # f32 bias (sublane-padded to 8)
    o_buf = 2 * tile_m * tile_n * 2      # bf16 out, double-buffered
    acc = tile_m * tile_n * 4            # f32 accumulator scratch
    return x_buf + w_buf + b_buf + o_buf + acc


def _pick_tile_m(n_rows, tile_k, tile_n, budget):
    tile_m = 8
    for c in (8, 16, 32, 64, 128, 256, 512, 1024, 2048):
        if c > _round_up(n_rows, 8):
            break
        if _vmem_estimate(c, tile_k, tile_n) <= budget:
            tile_m = c
    # v7x has 2 TensorCores per chip: prefer >=2 batch-grid steps over one huge tile so
    # both cores get work under "parallel" semantics (neutral on single-TC v5e/v6e).
    if pl.cdiv(n_rows, tile_m) < 2 and tile_m > 8:
        tile_m //= 2
    return tile_m


def data_parallel_forward(x, w, b, num_devices=2, tile_m=None, vmem_limit_bytes=None):
    """Pallas equivalent of _DataParallel(module).forward(x).

    x: [N, D]     bf16 - scattered along dim 0 (batch); every batch tile is an independent
                  grid step ("parallel"), the TPU analogue of scatter -> parallel_apply.
    w: [D, D_out] bf16 - transposed PyTorch Linear weight, replicated (streamed) to tiles.
    b: [1, D_out] f32  - replicated bias.
    Returns [N, D_out] in x.dtype - the dim-0 gather is realised by the output BlockSpec.
    """
    N, D = x.shape
    D_out = w.shape[1]
    assert N % num_devices == 0, "batch must be an integer multiple of #devices"
    assert D % 128 == 0 and D_out % 128 == 0, "pad feature dims to multiples of 128"

    if vmem_limit_bytes is None:
        vmem_limit_bytes = _vmem_budget_bytes()

    tile_k = _pick_feature_tile(D)
    tile_n = _pick_feature_tile(D_out)
    if tile_m is None:
        tile_m = _pick_tile_m(N, tile_k, tile_n, vmem_limit_bytes)
    assert tile_m % 8 == 0

    # Pad the batch up to a tile multiple instead of shrinking the tile; pad rows compute
    # relu(b) and are sliced off below (result is identical to per-chunk module apply).
    N_pad = _round_up(N, tile_m)
    x_in = jnp.pad(x, ((0, N_pad - N), (0, 0))) if N_pad != N else x

    grid = (N_pad // tile_m, D_out // tile_n, D // tile_k)

    cost = pl.CostEstimate(
        flops=2 * N_pad * D * D_out,
        transcendentals=0,
        bytes_accessed=(
            x_in.size * x_in.dtype.itemsize * grid[1]   # x re-read per output-column block
            + w.size * w.dtype.itemsize * grid[0]       # W re-read per batch tile
            + b.size * b.dtype.itemsize
            + N_pad * D_out * x.dtype.itemsize
        ),
    )

    # TODO(synk): if profiling shows exposed DMA on the streamed x tiles, add
    # pipeline_mode=pl.Buffered(3) to the x BlockSpec; when W is fully resident
    # (grid n == k == 1) pl.Buffered(1) on the W/bias specs would halve their VMEM.
    # TODO(synk): true multi-chip replicate()/gather() would use
    # pltpu.make_async_remote_copy over a device mesh; here device_ids are simulated by
    # disjoint slices of the (megacore-shardable) batch grid axis.
    out = pl.pallas_call(
        _replica_tile_kernel,
        out_shape=jax.ShapeDtypeStruct((N_pad, D_out), x.dtype),
        grid=grid,
        in_specs=[
            # scatter: batch tile i sees rows [i*tile_m, (i+1)*tile_m)
            pl.BlockSpec((tile_m, tile_k), lambda i, j, k: (i, k)),
            # replicate: weight streams over (k, j); independent of the batch index
            pl.BlockSpec((tile_k, tile_n), lambda i, j, k: (k, j)),
            pl.BlockSpec((1, tile_n), lambda i, j, k: (0, j)),
        ],
        # gather along dim 0: batch tile i writes output rows [i*tile_m, (i+1)*tile_m)
        out_specs=pl.BlockSpec((tile_m, tile_n), lambda i, j, k: (i, j)),
        scratch_shapes=[pltpu.VMEM((tile_m, tile_n), jnp.float32)],
        compiler_params=pltpu.CompilerParams(
            dimension_semantics=("parallel", "parallel", "arbitrary"),
            vmem_limit_bytes=vmem_limit_bytes,
        ),
        cost_estimate=cost,
    )(x_in, w, b)

    return out[:N] if N_pad != N else out


if __name__ == "__main__":
    # Deterministic example: batch=512, features=256 (lane-dense), simulated
    # device_ids=[0, 1].  tile_m auto-sizes to 256 -> grid=(2, 1, 1): two independent
    # "parallel" batch tiles (feeds both v7x TensorCores), weight streamed once per tile.
    key = jax.random.PRNGKey(0)
    kx, kw, kb = jax.random.split(key, 3)

    N, D, D_out = 512, 256, 256
    num_devices = 2

    x = jax.random.normal(kx, (N, D), dtype=jnp.float32).astype(jnp.bfloat16)
    # Wrapped-module parameters (Linear D->D_out), deterministically initialized.
    # PyTorch Linear weight is [D_out, D_in]; stored transposed so the hot path is x @ W.
    w = (jax.random.normal(kw, (D, D_out), dtype=jnp.float32) * 0.1).astype(jnp.bfloat16)
    b = jax.random.normal(kb, (1, D_out), dtype=jnp.float32) * 0.1

    out = data_parallel_forward(x, w, b, num_devices=num_devices)
    out = jax.block_until_ready(out)

    # Reference: DataParallel forward == wrapped module applied to the full batch.
    ref_f32 = jnp.maximum(x.astype(jnp.float32) @ w.astype(jnp.float32) + b, 0.0)
    assert out.shape == (N, D_out) and out.dtype == x.dtype
    assert jnp.allclose(out.astype(jnp.float32), ref_f32, atol=5e-2, rtol=5e-2)

    # Exercise the padded path (batch not a multiple of the chosen tile).
    N2 = 200
    x2 = jax.random.normal(kx, (N2, D), dtype=jnp.float32).astype(jnp.bfloat16)
    out2 = jax.block_until_ready(
        data_parallel_forward(x2, w, b, num_devices=num_devices))
    ref2 = jnp.maximum(x2.astype(jnp.float32) @ w.astype(jnp.float32) + b, 0.0)
    assert out2.shape == (N2, D_out)
    assert jnp.allclose(out2.astype(jnp.float32), ref2, atol=5e-2, rtol=5e-2)

    print("KERNEL_OK")
</pallas_src>

<mosaic_0001>
module attributes {stable_mosaic.version = 11 : i64} {
  func.func @_replica_tile_kernel(%arg0: i32, %arg1: i32, %arg2: i32, %arg3: memref<256x256xbf16, #tpu.memory_space<vmem>>, %arg4: memref<256x256xbf16, #tpu.memory_space<vmem>>, %arg5: memref<1x256xf32, #tpu.memory_space<vmem>>, %arg6: memref<256x256xbf16, #tpu.memory_space<vmem>>, %arg7: memref<256x256xf32, #tpu.memory_space<vmem>>) attributes {dimension_semantics = [#tpu.dimension_semantics<parallel>, #tpu.dimension_semantics<parallel>, #tpu.dimension_semantics<arbitrary>], iteration_bounds = array<i64: 2, 1, 1>, scalar_prefetch = 0 : i64, scratch_operands = 1 : i64, tpu.core_type = #tpu.core_type<tc>, window_params = [{transform_indices = @transform_0, window_bounds = array<i64: 256, 256>}, {transform_indices = @transform_1, window_bounds = array<i64: 256, 256>}, {transform_indices = @transform_2, window_bounds = array<i64: 1, 256>}, {transform_indices = @transform_3, window_bounds = array<i64: 256, 256>}]} {
    %c0_i32 = arith.constant 0 : i32
    %0 = arith.cmpi eq, %arg2, %c0_i32 : i32
    %1 = arith.extui %0 : i1 to i32
    %c0_i32_0 = arith.constant 0 : i32
    %2 = arith.cmpi ne, %1, %c0_i32_0 : i32
    scf.if %2 {
      %cst_10 = arith.constant 0.000000e+00 : f32
      %12 = vector.broadcast %cst_10 : f32 to vector<256x256xf32>
      %c0_11 = arith.constant 0 : index
      %c0_12 = arith.constant 0 : index
      %13 = vector.load %arg7[%c0_11, %c0_12] : memref<256x256xf32, #tpu.memory_space<vmem>>, vector<256x256xf32>
      tpu.vector_store %arg7[%c0_11, %c0_12], %12 {strides = array<i32>} : memref<256x256xf32, #tpu.memory_space<vmem>>, vector<256x256xf32>,
    } else {
    }
    %c0 = arith.constant 0 : index
    %c0_1 = arith.constant 0 : index
    %3 = vector.load %arg7[%c0, %c0_1] : memref<256x256xf32, #tpu.memory_space<vmem>>, vector<256x256xf32>
    %c0_2 = arith.constant 0 : index
    %c0_3 = arith.constant 0 : index
    %4 = vector.load %arg3[%c0_2, %c0_3] : memref<256x256xbf16, #tpu.memory_space<vmem>>, vector<256x256xbf16>
    %c0_4 = arith.constant 0 : index
    %c0_5 = arith.constant 0 : index
    %5 = vector.load %arg4[%c0_4, %c0_5] : memref<256x256xbf16, #tpu.memory_space<vmem>>, vector<256x256xbf16>
    %cst = arith.constant dense<0.000000e+00> : vector<256x256xf32>
    %6 = tpu.matmul %4, %5, %cst {dimension_numbers = #tpu.dot_dimension_numbers<[1], [0], [0], [1], [0, 0, 1, 1], [], []>} : vector<256x256xbf16>, vector<256x256xbf16>, vector<256x256xf32> -> vector<256x256xf32>
    %7 = arith.addf %3, %6 : vector<256x256xf32>
    %c0_6 = arith.constant 0 : index
    %c0_7 = arith.constant 0 : index
    %8 = vector.load %arg7[%c0_6, %c0_7] : memref<256x256xf32, #tpu.memory_space<vmem>>, vector<256x256xf32>
    tpu.vector_store %arg7[%c0_6, %c0_7], %7 {strides = array<i32>} : memref<256x256xf32, #tpu.memory_space<vmem>>, vector<256x256xf32>,
    %c0_i32_8 = arith.constant 0 : i32
    %9 = arith.cmpi eq, %arg2, %c0_i32_8 : i32
    %10 = arith.extui %9 : i1 to i32
    %c0_i32_9 = arith.constant 0 : i32
    %11 = arith.cmpi ne, %10, %c0_i32_9 : i32
    scf.if %11 {
      %c0_10 = arith.constant 0 : index
      %c0_11 = arith.constant 0 : index
      %12 = vector.load %arg7[%c0_10, %c0_11] : memref<256x256xf32, #tpu.memory_space<vmem>>, vector<256x256xf32>
      %c0_12 = arith.constant 0 : index
      %c0_13 = arith.constant 0 : index
      %13 = vector.load %arg5[%c0_12, %c0_13] : memref<1x256xf32, #tpu.memory_space<vmem>>, vector<1x256xf32>
      %14 = vector.broadcast %13 : vector<1x256xf32> to vector<256x256xf32>
      %15 = arith.addf %12, %14 : vector<256x256xf32>
      %cst_14 = arith.constant 0.000000e+00 : f32
      %16 = vector.broadcast %cst_14 : f32 to vector<256x256xf32>
      %17 = arith.maximumf %15, %16 : vector<256x256xf32>
      %18 = arith.truncf %17 : vector<256x256xf32> to vector<256x256xbf16>
      %c0_15 = arith.constant 0 : index
      %c0_16 = arith.constant 0 : index
      %19 = vector.load %arg6[%c0_15, %c0_16] : memref<256x256xbf16, #tpu.memory_space<vmem>>, vector<256x256xbf16>
      tpu.vector_store %arg6[%c0_15, %c0_16], %18 {strides = array<i32>} : memref<256x256xbf16, #tpu.memory_space<vmem>>, vector<256x256xbf16>,
    } else {
    }
    return
  }
  func.func @transform_0(%arg0: i32, %arg1: i32, %arg2: i32) -> (i32, i32) {
    %c0_i32 = arith.constant 0 : i32
    return %arg0, %arg2 : i32, i32
  }
  func.func @transform_1(%arg0: i32, %arg1: i32, %arg2: i32) -> (i32, i32) {
    %c0_i32 = arith.constant 0 : i32
    return %arg2, %arg1 : i32, i32
  }
  func.func @transform_2(%arg0: i32, %arg1: i32, %arg2: i32) -> (i32, i32) {
    %c0_i32 = arith.constant 0 : i32
    %c0_i32_0 = arith.constant 0 : i32
    return %c0_i32, %arg1 : i32, i32
  }
  func.func @transform_3(%arg0: i32, %arg1: i32, %arg2: i32) -> (i32, i32) {
    %c0_i32 = arith.constant 0 : i32
    return %arg0, %arg1 : i32, i32
  }
}

</mosaic_0001>

<bundles_post_ra>
// kernel: tpu_custom_call.1
= control target key start
LH: loop header
LB: loop body
LE: loop exit
PB: predicated region body
PF: predicated region fallthrough
CT: control target
= control target key end

     0   :  { %8 = vsyncpa [#allocation4], 0  ;;  %s2569_s0 = inlined_call_operand.hbm [shape: bf16[512,256], index: 0, kind: input, shape index: {}]   ;;  %s2570_s1 = inlined_call_operand.hbm [shape: bf16[256,256], index: 1, kind: input, shape index: {}]   ;;  %s2571_s2 = inlined_call_operand.vmem [shape: f32[1,256], index: 2, kind: input, shape index: {}]   ;;  %s2572_s3 = inlined_call_operand.hbm [shape: bf16[512,256], index: 3, kind: output, shape index: {}]  }
   0x1   :  { %10 = vsyncpa [#allocation4 + $0x1], 0 }
   0x2   :  { %11 = vsyncpa [#allocation7], 0 }
   0x3   :  { %12 = vsyncpa [#allocation5], 0 }
   0x4   :  { %14 = vsyncpa [#allocation5 + $0x1], 0  ;;  %s2200_s12 = smov 0   ;;  %s2202_s13 = smov 0  }
   0x5   :  { %s2204_s14 = smov 0   ;;  %s2206_s15 = smov 0  }
   0x6   :  { %s2208_s16 = smov 0   ;;  %s2210_s17 = smov 0  }
   0x7 LB: > { %s1670_s18 = sadd.s32 4294967295, %s2171_s17   ;;  %s1671_s19 = sadd.s32 4294967294, %s2171_s17   ;;  %s2171_s17 = sphi %s2210_s17, %s20_s17   ;;  %s2167_s16 = sphi %s2208_s16, %s2596_s16   ;;  %s2163_s15 = sphi %s2206_s15, %s2595_s15   ;;  %s2159_s14 = sphi %s2204_s14, %s2594_s14   ;;  %s2155_s13 = sphi %s2202_s13, %s2593_s13   ;;  %s2151_s12 = sphi %s2200_s12, %s2592_s12  }
   0x8   : > { %p61_p0 = scmp.ne.s32.totalorder %s2155_s13, %s2151_s12  ;;  %p2234_p1 = scmp.eq.s32.totalorder %s1670_s18, 0 }
   0x9   : > { %p2238_p2 = scmp.eq.s32.totalorder %s1670_s18, 1  ;;  %p147_p3 = scmp.eq.s32.totalorder %s1671_s19, 1 }
   0xa   : > { %s2577_s20 = scalar_select %p2234_p1, 1, 0 }
   0xb   : > { %s2578_s21 = scalar_select %p2238_p2, 1, 0 }
   0xc   : > { %p2244_p4 = por %p2234_p1, %p61_p0  ;;  %p1672_p5 = scmp.ge.s32.totalorder %s2171_s17, 1 }
   0xd   : > { %p2249_p6 = por %p147_p3, %p61_p0  ;;  %p154_p7 = scmp.lt.s32.totalorder %s2171_s17, 3 }
   0xe   : > { %s2579_s22 = scalar_select %p2244_p4, 1, 0 }
   0xf   : > { %s2580_s23 = scalar_select %p2249_p6, 1, 0 }
  0x10   : > { %p2254_p8 = pnand %p1672_p5, %p154_p7  ;;  %s2173_s25 = smov [#allocation6]  }
  0x11   : > { %s172_s26 = sshll.u32 %s2173_s25, 4  ;;  %s39_s28 = sadd.s32 1, %s2167_s16  ;;  %s173_s26 = int_to_ptr.vmem [resolvable:$true] %s172_s26 }
  0x12   : > { %s2581_s24 = scalar_select %p2254_p8, 1, 0 }
  0x13   : > { %p1862_p9 = pneg %p2254_p8  ;;  %s2027_s4 = scalar_lea.hbm %s2570_s1, 4096 }
  0x14   : > { %p2028_p12 = scmp.ne.s32.totalorder %s2570_s1, %s2027_s4  ;;  %p2034_p5 = scmp.lt.u32.totalorder %s2027_s4, %s2570_s1 }
  0x15   : > { %p2263_p11 = pnand %p1862_p9, %p2234_p1 }
  0x17   : > { %p2029_p13 = pneg %p2263_p11 }
  0x19   : > { %p2030_p0 = pnand %p2029_p13, %p2028_p12 }
  0x1b   : > { %p2031_p3 = pneg %p2030_p0 }
  0x1d   : > { %p2036_p7 = pnand %p2034_p5, %p2031_p3 }
  0x1f   : > { %2039 = shalt.err (!%p2036_p7)
}
  0x20   : > { %s2040_s9 = scalar_lea.vmem %s173_s26, 4096  ;;  %p2048_p1 = scmp.lt.s32.totalorder %s173_s26, %s173_s26 }
  0x21   : > { %p2041_p9 = scmp.ne.s32.totalorder %s173_s26, %s2040_s9  ;;  %p2049_p4 = scmp.lt.s32.totalorder %s2040_s9, %s2040_s9 }
  0x23   : > { %p2043_p10 = pnand %p2041_p9, %p2029_p13  ;;  %p2050_p8 = por %p2049_p4, %p2048_p1 }
  0x25   : > { %p2044_p6 = pneg %p2043_p10 }
  0x27   : > { %p2051_p2 = pnand %p2050_p8, %p2044_p6 }
  0x29   : > { %2054 = shalt.err (!%p2051_p2)
}
  0x2a   : > { %s2174_s10 = smov 128   ;;  %s2175_s11 = smov 8  }
  0x2b   : > { %1865 = dma.hbm_to_vmem [thread:$0]  (!%p2263_p11), %s2570_s1, 4096, %s173_s26, [#allocation7], %s2174_s10, %s2174_s10, %s2175_s11  }
  0x2c   : > { %p41_p1 = scmp.ge.s32.totalorder %s39_s28, 2  ;;  %s48_s25 = sadd.s32 1, %s2159_s14 }
  0x2d   : > { %p55_p2 = scmp.ne.s32.totalorder %s2159_s14, %s2155_s13  ;;  %p56_p4 = scmp.eq.s32.totalorder %s2171_s17, 0 }
  0x2e   : > { %s2598_s28 = smov (%p41_p1, %s39_s28), 0  ;;  %p2584_p8 = scmp.ne.s32.totalorder %s2578_s21, 0 }
  0x2f   : > { %p2293_p6 = por %p56_p4, %p55_p2  ;;  %s43_s30 = ssub.s32 %s2167_s16, %s2598_s28 }
  0x30   : > { %p2299_p10 = por %p2584_p8, %p55_p2  ;;  %p1875_p12 = scmp.lt.s32.totalorder %s2171_s17, 2 }
  0x31   : > { %p46_p11 = scmp.eq.s32.totalorder %s43_s30, 0  ;;  %s194_s26 = sand.u32 1, %s2159_s14  }
  0x32   : > { %s1676_s4 = sshll.u32 %s194_s26, 8  ;;  %s1787_s6 = sshll.u32 %s2167_s16, 12 }
  0x33   : > { %s2308_s5 = scalar_select %p46_p11, %s2159_s14, %s48_s25  }
  0x34   : > { %s2314_s9 = scalar_lea.hbm %s2569_s0, %s1787_s6  ;;  %s198_s21 = scalar_lea.vmem [#allocation3], %s1676_s4 }
  0x35   : > { %s208_s18 = sshll.u32 %s198_s21, 4  ;;  %p2320_p13 = pnand %p1875_p12, %p2293_p6  ;;  %s2316_s18 = int_to_ptr.vmem [resolvable:$true] %s208_s18 }
  0x36   : > { %s2324_s25 = scalar_lea.sflag [#allocation4], %s194_s26  ;;  %s2055_s30 = scalar_lea.hbm %s2314_s9, 4096 }
  0x37   : > { %p2056_p0 = scmp.ne.s32.totalorder %s2314_s9, %s2055_s30  ;;  %p2057_p3 = pneg %p2320_p13 }
  0x38   : > { %s2060_s29 = scalar_lea.hbm %s2569_s0, 8192  ;;  %p2061_p9 = scmp.lt.u32.totalorder %s2314_s9, %s2569_s0 }
  0x39   : > { %p2058_p5 = pnand %p2057_p3, %p2056_p0  ;;  %p2062_p1 = scmp.lt.u32.totalorder %s2060_s29, %s2055_s30 }
  0x3a   : > { %p2064_p4 = scmp.lt.u32.totalorder %s2055_s30, %s2314_s9 }
  0x3b   : > { %p2059_p7 = pneg %p2058_p5  ;;  %p2063_p2 = por %p2062_p1, %p2061_p9 }
  0x3d   : > { %p2065_p6 = por %p2064_p4, %p2063_p2 }
  0x3f   : > { %p2066_p8 = pnand %p2065_p6, %p2059_p7 }
  0x41   : > { %2069 = shalt.err (!%p2066_p8)
}
  0x42   : > { %s2070_s26 = scalar_lea.vmem %s2316_s18, 4096  ;;  %s2176_s21 = smov [#allocation3]  }
  0x43   : > { %p2071_p12 = scmp.ne.s32.totalorder %s2316_s18, %s2070_s26  ;;  %s2075_s4 = sshll.u32 %s2176_s21, 4  ;;  %s2076_s4 = int_to_ptr.vmem [resolvable:$false] %s2075_s4 }
  0x44   : > { %s2077_s6 = scalar_lea.vmem %s2076_s4, 8192  ;;  %p2078_p5 = scmp.lt.s32.totalorder %s2316_s18, %s2076_s4 }
  0x45   : > { %p2073_p11 = pnand %p2071_p12, %p2057_p3  ;;  %p2079_p9 = scmp.lt.s32.totalorder %s2077_s6, %s2070_s26 }
  0x47   : > { %p2074_p0 = pneg %p2073_p11  ;;  %p2080_p1 = por %p2079_p9, %p2078_p5 }
  0x49   : > { %p2081_p2 = pnand %p2080_p1, %p2074_p0 }
  0x4b   : > { %2084 = shalt.err (!%p2081_p2)
}
  0x4c   : > { %1869 = dma.hbm_to_vmem [thread:$0]  (!%p2320_p13), %s2314_s9, 4096, %s2316_s18, %s2324_s25, %s2174_s10, %s2174_s10, %s2175_s11  }
  0x4d   : > { %p2587_p3 = scmp.ne.s32.totalorder %s2581_s24, 0 }
  0x4e   : > { %s2358_s30 = sand.u32 (!%p2587_p3), 1, %s2155_s13   ;;  %p2588_p7 = scmp.ne.s32.totalorder (!%p2587_p3), %s2579_s22, 0 }
  0x4f   : > { %220 = sbr.rel (%p2587_p3) target bundleno = 447 (0x1bf), region = 32  ;;  %s1681_s29 = sshll.u32 (!%p2587_p3), %s2358_s30, 8 }
  0x50   : > { %s223_s7 = scalar_lea.sflag (!%p2587_p3), [#allocation4], %s2358_s30  ;;  %s2364_s19 = scalar_lea.vmem (!%p2587_p3), [#allocation3], %s1681_s29 }
  0x56   : > { %2138 = dma.done.wait (%p2588_p7), %s223_s7, 4096  }
  0x57   : > { %2140 = vsyncadd (%p2588_p7), %s223_s7, 4294963200  ;;  %p2589_p13 = scmp.ne.s32.totalorder %s2577_s20, 0 }
  0x59   : > { %2142 = dma.done.wait (%p2589_p13), [#allocation7], 4096  }
  0x5a   : > { %2144 = vsyncadd (%p2589_p13), [#allocation7], 4294963200  ;;  %v1931_v0 = vld [vmem:[#allocation6 + $0x4] ss:$8 sps:$4 sm:$0xff]   ;;  %v1933_v1 = vld [vmem:[#allocation6] ss:$8 sps:$4 sm:$0xff]  }
  0x5b   : > { %784 = vmatprep.subr.bf16.mxu0 %v1931_v0  ;;  %1822 = vmatprep.subr.bf16.mxu1 %v1931_v0  ;;  %v1934_v2 = vld [vmem:[#allocation6 + $0x14] ss:$8 sps:$4 sm:$0xff]   ;;  %v1936_v3 = vld [vmem:[#allocation6 + $0x10] ss:$8 sps:$4 sm:$0xff]   ;;  %v1937_v4 = vld [vmem:[#allocation6 + $0x24] ss:$8 sps:$4 sm:$0xff]   ;;  %v1174_v0 = vlaneseq }
  0x5c   : > { %785 = vmatpush1.bf16.msra.mxu0 %v1933_v1  ;;  %1838 = vmatpush1.bf16.msra.mxu1 %v1933_v1  ;;  %v1939_v5 = vld [vmem:[#allocation6 + $0x20] ss:$8 sps:$4 sm:$0xff]   ;;  %v1940_v6 = vld [vmem:[#allocation6 + $0x34] ss:$8 sps:$4 sm:$0xff]   ;;  %v1942_v7 = vld [vmem:[#allocation6 + $0x30] ss:$8 sps:$4 sm:$0xff]  }
  0x5d   : > { %786 = vmatprep.subr.bf16.mxu0 %v1934_v2  ;;  %1823 = vmatprep.subr.bf16.mxu1 %v1934_v2  ;;  %v1943_v8 = vld [vmem:[#allocation6 + $0x44] ss:$8 sps:$4 sm:$0xff]   ;;  %v1945_v9 = vld [vmem:[#allocation6 + $0x40] ss:$8 sps:$4 sm:$0xff]   ;;  %v1946_v10 = vld [vmem:[#allocation6 + $0x54] ss:$8 sps:$4 sm:$0xff]  }
  0x5e   : > { %v1948_v11 = vld [vmem:[#allocation6 + $0x50] ss:$8 sps:$4 sm:$0xff]   ;;  %v1949_v12 = vld [vmem:[#allocation6 + $0x64] ss:$8 sps:$4 sm:$0xff]   ;;  %v1951_v14 = vld [vmem:[#allocation6 + $0x60] ss:$8 sps:$4 sm:$0xff]  }
  0x5f   : > { %v1981_v13 = vld [vmem:[%s2364_s19 + $0x4] ss:$8 sps:$4 sm:$0xff]   ;;  %v1952_v16 = vld [vmem:[#allocation6 + $0x74] ss:$8 sps:$4 sm:$0xff]   ;;  %v1954_v17 = vld [vmem:[#allocation6 + $0x70] ss:$8 sps:$4 sm:$0xff]  }
  0x60   : > { %787 = vmatpush1.bf16.msra.mxu0 %v1936_v3  ;;  %1839 = vmatpush1.bf16.msra.mxu1 %v1936_v3  ;;  %v1984_v15 = vld [vmem:[%s2364_s19 + $0x84] ss:$8 sps:$4 sm:$0xff]   ;;  %v1957_v19 = vld [vmem:[#allocation6 + $0x80] ss:$8 sps:$4 sm:$0xff]   ;;  %v1958_v20 = vld [vmem:[#allocation6 + $0x94] ss:$8 sps:$4 sm:$0xff]  }
  0x61   : > { %788 = vmatprep.subr.bf16.mxu0 %v1937_v4  ;;  %1824 = vmatprep.subr.bf16.mxu1 %v1937_v4  ;;  %v1955_v18 = vld [vmem:[#allocation6 + $0x84] ss:$8 sps:$4 sm:$0xff]   ;;  %v1960_v21 = vld [vmem:[#allocation6 + $0x90] ss:$8 sps:$4 sm:$0xff]   ;;  %v1963_v23 = vld [vmem:[#allocation6 + $0xa0] ss:$8 sps:$4 sm:$0xff]  }
  0x62   : > { %816 = vmatprep.mubr.bf16.mxu0 %v1981_v13  ;;  %896 = vmatprep.mubr.bf16.mxu1 %v1984_v15  ;;  %v1961_v22 = vld [vmem:[#allocation6 + $0xa4] ss:$8 sps:$4 sm:$0xff]   ;;  %v1964_v24 = vld [vmem:[#allocation6 + $0xb4] ss:$8 sps:$4 sm:$0xff]   ;;  %v1966_v25 = vld [vmem:[#allocation6 + $0xb0] ss:$8 sps:$4 sm:$0xff]  }
  0x63   : > { %v1967_v26 = vld [vmem:[#allocation6 + $0xc4] ss:$8 sps:$4 sm:$0xff]   ;;  %v1969_v27 = vld [vmem:[#allocation6 + $0xc0] ss:$8 sps:$4 sm:$0xff]   ;;  %v1970_v28 = vld [vmem:[#allocation6 + $0xd4] ss:$8 sps:$4 sm:$0xff]  }
  0x64   : > { %789 = vmatpush1.bf16.msra.mxu0 %v1939_v5  ;;  %1840 = vmatpush1.bf16.msra.mxu1 %v1939_v5  ;;  %v1972_v29 = vld [vmem:[#allocation6 + $0xd0] ss:$8 sps:$4 sm:$0xff]   ;;  %v1973_v30 = vld [vmem:[#allocation6 + $0xe4] ss:$8 sps:$4 sm:$0xff]   ;;  %v1975_v31 = vld [vmem:[#allocation6 + $0xe0] ss:$8 sps:$4 sm:$0xff]  }
  0x65   : > { %790 = vmatprep.subr.bf16.mxu0 %v1940_v6  ;;  %1825 = vmatprep.subr.bf16.mxu1 %v1940_v6  ;;  %v1976_v32 = vld [vmem:[#allocation6 + $0xf4] ss:$8 sps:$4 sm:$0xff]   ;;  %v1978_v33 = vld [vmem:[#allocation6 + $0xf0] ss:$8 sps:$4 sm:$0xff]   ;;  %v1979_v34 = vld [vmem:[%s2364_s19] ss:$8 sps:$4 sm:$0xff]  }
  0x66   : > { %v1982_v35 = vld [vmem:[%s2364_s19 + $0x80] ss:$8 sps:$4 sm:$0xff]   ;;  %v1985_v36 = vld [vmem:[%s2364_s19 + $0x14] ss:$8 sps:$4 sm:$0xff]   ;;  %v1989_v38 = vld [vmem:[%s2364_s19 + $0x10] ss:$8 sps:$4 sm:$0xff]  }
  0x67   : > { %v1987_v37 = vld [vmem:[%s2364_s19 + $0x94] ss:$8 sps:$4 sm:$0xff]   ;;  %v1990_v39 = vld [vmem:[%s2364_s19 + $0x90] ss:$8 sps:$4 sm:$0xff]   ;;  %v1991_v40 = vld [vmem:[%s2364_s19 + $0x24] ss:$8 sps:$4 sm:$0xff]  }
  0x68   : > { %791 = vmatpush1.bf16.msra.mxu0 %v1942_v7  ;;  %1841 = vmatpush1.bf16.msra.mxu1 %v1942_v7  ;;  %v1993_v41 = vld [vmem:[%s2364_s19 + $0xa4] ss:$8 sps:$4 sm:$0xff]   ;;  %v1995_v42 = vld [vmem:[%s2364_s19 + $0x20] ss:$8 sps:$4 sm:$0xff]   ;;  %v1997_v44 = vld [vmem:[%s2364_s19 + $0x34] ss:$8 sps:$4 sm:$0xff]  }
  0x69   : > { %792 = vmatprep.subr.bf16.mxu0 %v1943_v8  ;;  %1826 = vmatprep.subr.bf16.mxu1 %v1943_v8  ;;  %v1996_v43 = vld [vmem:[%s2364_s19 + $0xa0] ss:$8 sps:$4 sm:$0xff]   ;;  %v1999_v45 = vld [vmem:[%s2364_s19 + $0xb4] ss:$8 sps:$4 sm:$0xff]   ;;  %v2001_v46 = vld [vmem:[%s2364_s19 + $0x30] ss:$8 sps:$4 sm:$0xff]  }
  0x6a   : > { %v2002_v47 = vld [vmem:[%s2364_s19 + $0xb0] ss:$8 sps:$4 sm:$0xff]   ;;  %v2003_v48 = vld [vmem:[%s2364_s19 + $0x44] ss:$8 sps:$4 sm:$0xff]   ;;  %v2007_v50 = vld [vmem:[%s2364_s19 + $0x40] ss:$8 sps:$4 sm:$0xff]  }
  0x6b   : > { %v2005_v49 = vld [vmem:[%s2364_s19 + $0xc4] ss:$8 sps:$4 sm:$0xff]   ;;  %v2008_v51 = vld [vmem:[%s2364_s19 + $0xc0] ss:$8 sps:$4 sm:$0xff]   ;;  %v2009_v52 = vld [vmem:[%s2364_s19 + $0x54] ss:$8 sps:$4 sm:$0xff]  }
  0x6c   : > { %793 = vmatpush1.bf16.msra.mxu0 %v1945_v9  ;;  %1842 = vmatpush1.bf16.msra.mxu1 %v1945_v9  ;;  %v2011_v53 = vld [vmem:[%s2364_s19 + $0xd4] ss:$8 sps:$4 sm:$0xff]   ;;  %v2013_v54 = vld [vmem:[%s2364_s19 + $0x50] ss:$8 sps:$4 sm:$0xff]   ;;  %v2015_v56 = vld [vmem:[%s2364_s19 + $0x64] ss:$8 sps:$4 sm:$0xff]  }
  0x6d   : > { %794 = vmatprep.subr.bf16.mxu0 %v1946_v10  ;;  %1827 = vmatprep.subr.bf16.mxu1 %v1946_v10  ;;  %v2014_v55 = vld [vmem:[%s2364_s19 + $0xd0] ss:$8 sps:$4 sm:$0xff]   ;;  %v2017_v57 = vld [vmem:[%s2364_s19 + $0xe4] ss:$8 sps:$4 sm:$0xff]   ;;  %v2019_v58 = vld [vmem:[%s2364_s19 + $0x60] ss:$8 sps:$4 sm:$0xff]  }
  0x6e   : > { %v2020_v59 = vld [vmem:[%s2364_s19 + $0xe0] ss:$8 sps:$4 sm:$0xff]   ;;  %v2021_v60 = vld [vmem:[%s2364_s19 + $0x74] ss:$8 sps:$4 sm:$0xff]   ;;  %v2025_v62 = vld [vmem:[%s2364_s19 + $0x70] ss:$8 sps:$4 sm:$0xff]  }
  0x6f   : > { %v2023_v61 = vld [vmem:[%s2364_s19 + $0xf4] ss:$8 sps:$4 sm:$0xff]   ;;  %v2026_v63 = vld [vmem:[%s2364_s19 + $0xf0] ss:$8 sps:$4 sm:$0xff]   ;;  %v1175_v1 = vshrl.u32 %v1174_v0, 7  ;;  %s2423_s24 = scalar_lea.vmem [#allocation8], %s1681_s29 }
  0x70   : > { %795 = vmatpush1.bf16.msra.mxu0 %v1948_v11  ;;  %1843 = vmatpush1.bf16.msra.mxu1 %v1948_v11  ;;  %v1172_v3 = vld [vmem:[%s2571_s2] sm:$0x3]  ;;  %s1821_s10 = sshll.u32 %s2163_s15, 12  ;;  %s1553_s11 = sshll.u32 %s2423_s24, 4  ;;  %s2516_s11 = int_to_ptr.vmem [resolvable:$true] %s1553_s11 }
  0x71   : > { %796 = vmatprep.subr.bf16.mxu0 %v1949_v12  ;;  %1828 = vmatprep.subr.bf16.mxu1 %v1949_v12  ;;  %v1176_v2 = vsub.s32 0, %v1175_v1  ;;  %v1180_v4 = vsub.s32 1, %v1175_v1  ;;  %s2514_s25 = scalar_lea.hbm %s2572_s3, %s1821_s10  ;;  %s1537_s15 = scalar_lea.sflag [#allocation5], %s2358_s30 }
  0x72   : > { %s2085_s8 = scalar_lea.vmem %s2516_s11, 4096  ;;  %s2177_s26 = smov [#allocation8]  }
  0x73   : > { %v2409_v5 = vrot.slane %v1172_v3, %v1176_v2  ;;  %v2411_v6 = vrot.slane %v1172_v3, %v1180_v4  ;;  %p2086_p4 = scmp.ne.s32.totalorder %s2516_s11, %s2085_s8  ;;  %s2089_s21 = sshll.u32 %s2177_s26, 4  ;;  %s2090_s21 = int_to_ptr.vmem [resolvable:$false] %s2089_s21 }
  0x74   : > { %797 = vmatpush1.bf16.msra.mxu0 %v1951_v14  ;;  %1844 = vmatpush1.bf16.msra.mxu1 %v1951_v14  ;;  %s2091_s4 = scalar_lea.vmem %s2090_s21, 8192  ;;  %p2092_p12 = scmp.lt.s32.totalorder %s2516_s11, %s2090_s21 }
  0x75   : > { %798 = vmatprep.subr.bf16.mxu0 %v1952_v16  ;;  %1829 = vmatprep.subr.bf16.mxu1 %v1952_v16  ;;  %p2087_p6 = pnand %p2086_p4, %p2299_p10  ;;  %p2093_p11 = scmp.lt.s32.totalorder %s2091_s4, %s2085_s8 }
  0x77   : > { %p2088_p8 = pneg %p2087_p6  ;;  %p2094_p0 = por %p2093_p11, %p2092_p12 }
  0x78   : > { %799 = vmatpush1.bf16.msra.mxu0 %v1954_v17  ;;  %1845 = vmatpush1.bf16.msra.mxu1 %v1954_v17 }
  0x79   : > { %800 = vmatprep.subr.bf16.mxu0 %v1955_v18  ;;  %1830 = vmatprep.subr.bf16.mxu1 %v1955_v18  ;;  %p2095_p5 = pnand %p2094_p0, %p2088_p8 }
  0x7c   : > { %801 = vmatpush1.bf16.msra.mxu0 %v1957_v19  ;;  %1846 = vmatpush1.bf16.msra.mxu1 %v1957_v19 }
  0x7d   : > { %802 = vmatprep.subr.bf16.mxu0 %v1958_v20  ;;  %1831 = vmatprep.subr.bf16.mxu1 %v1958_v20 }
  0x80   : > { %803 = vmatpush1.bf16.msra.mxu0 %v1960_v21  ;;  %1847 = vmatpush1.bf16.msra.mxu1 %v1960_v21 }
  0x81   : > { %804 = vmatprep.subr.bf16.mxu0 %v1961_v22  ;;  %1832 = vmatprep.subr.bf16.mxu1 %v1961_v22 }
  0x84   : > { %805 = vmatpush1.bf16.msra.mxu0 %v1963_v23  ;;  %1848 = vmatpush1.bf16.msra.mxu1 %v1963_v23 }
  0x85   : > { %806 = vmatprep.subr.bf16.mxu0 %v1964_v24  ;;  %1833 = vmatprep.subr.bf16.mxu1 %v1964_v24 }
  0x88   : > { %807 = vmatpush1.bf16.msra.mxu0 %v1966_v25  ;;  %1849 = vmatpush1.bf16.msra.mxu1 %v1966_v25 }
  0x89   : > { %808 = vmatprep.subr.bf16.mxu0 %v1967_v26  ;;  %1834 = vmatprep.subr.bf16.mxu1 %v1967_v26 }
  0x8c   : > { %809 = vmatpush1.bf16.msra.mxu0 %v1969_v27  ;;  %1850 = vmatpush1.bf16.msra.mxu1 %v1969_v27 }
  0x8d   : > { %810 = vmatprep.subr.bf16.mxu0 %v1970_v28  ;;  %1835 = vmatprep.subr.bf16.mxu1 %v1970_v28 }
  0x90   : > { %811 = vmatpush1.bf16.msra.mxu0 %v1972_v29  ;;  %1851 = vmatpush1.bf16.msra.mxu1 %v1972_v29 }
  0x91   : > { %812 = vmatprep.subr.bf16.mxu0 %v1973_v30  ;;  %1836 = vmatprep.subr.bf16.mxu1 %v1973_v30 }
  0x94   : > { %813 = vmatpush1.bf16.msra.mxu0 %v1975_v31  ;;  %1852 = vmatpush1.bf16.msra.mxu1 %v1975_v31 }
  0x95   : > { %814 = vmatprep.subr.bf16.mxu0 %v1976_v32  ;;  %1837 = vmatprep.subr.bf16.mxu1 %v1976_v32 }
  0x98   : > { %815 = vmatpush1.bf16.msra.mxu0 %v1978_v33  ;;  %1853 = vmatpush1.bf16.msra.mxu1 %v1978_v33 }
  0x9b   : > { %817 = vmatmul.mubr.bf16.vlgmr.msra.gmra.mrb[0].mxu0 %v1979_v34  ;;  %897 = vmatmul.mubr.bf16.vlgmr.msra.gmra.mrb[0].mxu1 %v1982_v35 }
  0x9c   : > { %826 = vmatprep.mubr.bf16.mxu0 %v1985_v36  ;;  %906 = vmatprep.mubr.bf16.mxu1 %v1987_v37 }
  0xa3   : > { %827 = vmatmul.mubr.bf16.gmra.mrb[4].mxu0 %v1989_v38  ;;  %907 = vmatmul.mubr.bf16.gmra.mrb[4].mxu1 %v1990_v39 }
  0xa4   : > { %836 = vmatprep.mubr.bf16.mxu0 %v1991_v40  ;;  %916 = vmatprep.mubr.bf16.mxu1 %v1993_v41 }
  0xab   : > { %837 = vmatmul.mubr.bf16.gmra.mrb[8].mxu0 %v1995_v42  ;;  %917 = vmatmul.mubr.bf16.gmra.mrb[8].mxu1 %v1996_v43 }
  0xac   : > { %846 = vmatprep.mubr.bf16.mxu0 %v1997_v44  ;;  %926 = vmatprep.mubr.bf16.mxu1 %v1999_v45 }
  0xb3   : > { %847 = vmatmul.mubr.bf16.gmra.mrb[12].mxu0 %v2001_v46  ;;  %927 = vmatmul.mubr.bf16.gmra.mrb[12].mxu1 %v2002_v47 }
  0xb4   : > { %856 = vmatprep.mubr.bf16.mxu0 %v2003_v48  ;;  %936 = vmatprep.mubr.bf16.mxu1 %v2005_v49 }
  0xbb   : > { %857 = vmatmul.mubr.bf16.gmra.mrb[16].mxu0 %v2007_v50  ;;  %937 = vmatmul.mubr.bf16.gmra.mrb[16].mxu1 %v2008_v51 }
  0xbc   : > { %866 = vmatprep.mubr.bf16.mxu0 %v2009_v52  ;;  %946 = vmatprep.mubr.bf16.mxu1 %v2011_v53 }
  0xc3   : > { %867 = vmatmul.mubr.bf16.gmra.mrb[20].mxu0 %v2013_v54  ;;  %947 = vmatmul.mubr.bf16.gmra.mrb[20].mxu1 %v2014_v55 }
  0xc4   : > { %876 = vmatprep.mubr.bf16.mxu0 %v2015_v56  ;;  %956 = vmatprep.mubr.bf16.mxu1 %v2017_v57 }
  0xcb   : > { %877 = vmatmul.mubr.bf16.gmra.mrb[24].mxu0 %v2019_v58  ;;  %957 = vmatmul.mubr.bf16.gmra.mrb[24].mxu1 %v2020_v59 }
  0xcc   : > { %886 = vmatprep.mubr.bf16.mxu0 %v2021_v60  ;;  %966 = vmatprep.mubr.bf16.mxu1 %v2023_v61 }
  0xd3   : > { %887 = vmatmul.mubr.bf16.gmra.mrb[28].mxu0 %v2025_v62  ;;  %967 = vmatmul.mubr.bf16.gmra.mrb[28].mxu1 %v2026_v63 }
 0x16e   : > { %v818_v7 = vpop.f32.mrb[0].mxu0  ;;  %v898_v8 = vpop.f32.mrb[0].mxu1 }
 0x16f   : > { %v1184_v9 = vadd.f32 %v2409_v5, %v818_v7  ;;  %v1216_v10 = vadd.f32 %v2409_v5, %v898_v8  ;;  %v820_v11 = vpop.f32.mrb[1].mxu0  ;;  %v900_v12 = vpop.f32.mrb[1].mxu1 }
 0x170   : > { %v1185_v13 = vadd.f32 %v2411_v6, %v820_v11  ;;  %v1217_v14 = vadd.f32 %v2411_v6, %v900_v12  ;;  %v822_v15 = vpop.f32.mrb[2].mxu0  ;;  %v902_v16 = vpop.f32.mrb[2].mxu1 }
 0x171   : > { %v1248_v17 = vmax.f32 %v1184_v9, 0.0  ;;  %v1280_v18 = vmax.f32 %v1216_v10, 0.0  ;;  %v1186_v19 = vadd.f32 %v2409_v5, %v822_v15  ;;  %v1218_v20 = vadd.f32 %v2409_v5, %v902_v16  ;;  %v824_v21 = vpop.f32.mrb[3].mxu0  ;;  %v904_v22 = vpop.f32.mrb[3].mxu1 }
 0x172   : > { %v1249_v23 = vmax.f32 %v1185_v13, 0.0  ;;  %v1281_v24 = vmax.f32 %v1217_v14, 0.0  ;;  %v1187_v25 = vadd.f32 %v2411_v6, %v824_v21  ;;  %v1219_v26 = vadd.f32 %v2411_v6, %v904_v22 }
 0x173   : > { %v1250_v27 = vmax.f32 %v1186_v19, 0.0  ;;  %v1282_v28 = vmax.f32 %v1218_v20, 0.0 }
 0x174   : > { %v1788_v29 = vpack.c.bf16 %v1249_v23, %v1248_v17  ;;  %v1804_v30 = vpack.c.bf16 %v1281_v24, %v1280_v18  ;;  %v1251_v31 = vmax.f32 %v1187_v25, 0.0  ;;  %v1283_v32 = vmax.f32 %v1219_v26, 0.0 }
 0x176   : > { %1504 = vst [vmem:[%s2423_s24] sm:$0xff] %v1788_v29  ;;  %1520 = vst [vmem:[%s2423_s24 + $0x80] sm:$0xff] %v1804_v30  ;;  %v1789_v33 = vpack.c.bf16 %v1251_v31, %v1250_v27  ;;  %v1805_v34 = vpack.c.bf16 %v1283_v32, %v1282_v28  ;;  %v828_v35 = vpop.f32.mrb[4].mxu0  ;;  %v908_v36 = vpop.f32.mrb[4].mxu1 }
 0x177   : > { %v1188_v37 = vadd.f32 %v2409_v5, %v828_v35  ;;  %v1220_v38 = vadd.f32 %v2409_v5, %v908_v36  ;;  %v830_v39 = vpop.f32.mrb[5].mxu0  ;;  %v910_v40 = vpop.f32.mrb[5].mxu1 }
 0x178   : > { %1505 = vst [vmem:[%s2423_s24 + $0x8] sm:$0xff] %v1789_v33  ;;  %1521 = vst [vmem:[%s2423_s24 + $0x88] sm:$0xff] %v1805_v34  ;;  %v1189_v41 = vadd.f32 %v2411_v6, %v830_v39  ;;  %v1221_v42 = vadd.f32 %v2411_v6, %v910_v40  ;;  %v832_v43 = vpop.f32.mrb[6].mxu0  ;;  %v912_v44 = vpop.f32.mrb[6].mxu1 }
 0x179   : > { %v1252_v45 = vmax.f32 %v1188_v37, 0.0  ;;  %v1284_v46 = vmax.f32 %v1220_v38, 0.0  ;;  %v1190_v47 = vadd.f32 %v2409_v5, %v832_v43  ;;  %v1222_v48 = vadd.f32 %v2409_v5, %v912_v44  ;;  %v834_v49 = vpop.f32.mrb[7].mxu0  ;;  %v914_v50 = vpop.f32.mrb[7].mxu1 }
 0x17a   : > { %v1253_v51 = vmax.f32 %v1189_v41, 0.0  ;;  %v1285_v52 = vmax.f32 %v1221_v42, 0.0  ;;  %v1191_v53 = vadd.f32 %v2411_v6, %v834_v49  ;;  %v1223_v54 = vadd.f32 %v2411_v6, %v914_v50 }
 0x17b   : > { %v1254_v55 = vmax.f32 %v1190_v47, 0.0  ;;  %v1286_v56 = vmax.f32 %v1222_v48, 0.0 }
 0x17c   : > { %v1790_v57 = vpack.c.bf16 %v1253_v51, %v1252_v45  ;;  %v1806_v58 = vpack.c.bf16 %v1285_v52, %v1284_v46  ;;  %v1255_v59 = vmax.f32 %v1191_v53, 0.0  ;;  %v1287_v60 = vmax.f32 %v1223_v54, 0.0 }
 0x17e   : > { %1506 = vst [vmem:[%s2423_s24 + $0x10] sm:$0xff] %v1790_v57  ;;  %1522 = vst [vmem:[%s2423_s24 + $0x90] sm:$0xff] %v1806_v58  ;;  %v1791_v61 = vpack.c.bf16 %v1255_v59, %v1254_v55  ;;  %v1807_v62 = vpack.c.bf16 %v1287_v60, %v1286_v56  ;;  %v838_v63 = vpop.f32.mrb[8].mxu0  ;;  %v918_v0 = vpop.f32.mrb[8].mxu1 }
 0x17f   : > { %v1192_v1 = vadd.f32 %v2409_v5, %v838_v63  ;;  %v1224_v2 = vadd.f32 %v2409_v5, %v918_v0  ;;  %v840_v3 = vpop.f32.mrb[9].mxu0  ;;  %v920_v4 = vpop.f32.mrb[9].mxu1 }
 0x180   : > { %1507 = vst [vmem:[%s2423_s24 + $0x18] sm:$0xff] %v1791_v61  ;;  %1523 = vst [vmem:[%s2423_s24 + $0x98] sm:$0xff] %v1807_v62  ;;  %v1193_v7 = vadd.f32 %v2411_v6, %v840_v3  ;;  %v1225_v8 = vadd.f32 %v2411_v6, %v920_v4  ;;  %v842_v9 = vpop.f32.mrb[10].mxu0  ;;  %v922_v10 = vpop.f32.mrb[10].mxu1 }
 0x181   : > { %v1256_v11 = vmax.f32 %v1192_v1, 0.0  ;;  %v1288_v12 = vmax.f32 %v1224_v2, 0.0  ;;  %v1194_v13 = vadd.f32 %v2409_v5, %v842_v9  ;;  %v1226_v14 = vadd.f32 %v2409_v5, %v922_v10  ;;  %v844_v15 = vpop.f32.mrb[11].mxu0  ;;  %v924_v16 = vpop.f32.mrb[11].mxu1 }
 0x182   : > { %v1257_v17 = vmax.f32 %v1193_v7, 0.0  ;;  %v1289_v18 = vmax.f32 %v1225_v8, 0.0  ;;  %v1195_v19 = vadd.f32 %v2411_v6, %v844_v15  ;;  %v1227_v20 = vadd.f32 %v2411_v6, %v924_v16 }
 0x183   : > { %v1258_v21 = vmax.f32 %v1194_v13, 0.0  ;;  %v1290_v22 = vmax.f32 %v1226_v14, 0.0 }
 0x184   : > { %v1792_v23 = vpack.c.bf16 %v1257_v17, %v1256_v11  ;;  %v1808_v24 = vpack.c.bf16 %v1289_v18, %v1288_v12  ;;  %v1259_v25 = vmax.f32 %v1195_v19, 0.0  ;;  %v1291_v26 = vmax.f32 %v1227_v20, 0.0 }
 0x186   : > { %1508 = vst [vmem:[%s2423_s24 + $0x20] sm:$0xff] %v1792_v23  ;;  %1524 = vst [vmem:[%s2423_s24 + $0xa0] sm:$0xff] %v1808_v24  ;;  %v1793_v27 = vpack.c.bf16 %v1259_v25, %v1258_v21  ;;  %v1809_v28 = vpack.c.bf16 %v1291_v26, %v1290_v22  ;;  %v848_v29 = vpop.f32.mrb[12].mxu0  ;;  %v928_v30 = vpop.f32.mrb[12].mxu1 }
 0x187   : > { %v1196_v31 = vadd.f32 %v2409_v5, %v848_v29  ;;  %v1228_v32 = vadd.f32 %v2409_v5, %v928_v30  ;;  %v850_v33 = vpop.f32.mrb[13].mxu0  ;;  %v930_v34 = vpop.f32.mrb[13].mxu1 }
 0x188   : > { %1509 = vst [vmem:[%s2423_s24 + $0x28] sm:$0xff] %v1793_v27  ;;  %1525 = vst [vmem:[%s2423_s24 + $0xa8] sm:$0xff] %v1809_v28  ;;  %v1197_v35 = vadd.f32 %v2411_v6, %v850_v33  ;;  %v1229_v36 = vadd.f32 %v2411_v6, %v930_v34  ;;  %v852_v37 = vpop.f32.mrb[14].mxu0  ;;  %v932_v38 = vpop.f32.mrb[14].mxu1 }
 0x189   : > { %v1260_v39 = vmax.f32 %v1196_v31, 0.0  ;;  %v1292_v40 = vmax.f32 %v1228_v32, 0.0  ;;  %v1198_v41 = vadd.f32 %v2409_v5, %v852_v37  ;;  %v1230_v42 = vadd.f32 %v2409_v5, %v932_v38  ;;  %v854_v43 = vpop.f32.mrb[15].mxu0  ;;  %v934_v44 = vpop.f32.mrb[15].mxu1 }
 0x18a   : > { %v1261_v45 = vmax.f32 %v1197_v35, 0.0  ;;  %v1293_v46 = vmax.f32 %v1229_v36, 0.0  ;;  %v1199_v47 = vadd.f32 %v2411_v6, %v854_v43  ;;  %v1231_v48 = vadd.f32 %v2411_v6, %v934_v44 }
 0x18b   : > { %v1262_v49 = vmax.f32 %v1198_v41, 0.0  ;;  %v1294_v50 = vmax.f32 %v1230_v42, 0.0 }
 0x18c   : > { %v1794_v51 = vpack.c.bf16 %v1261_v45, %v1260_v39  ;;  %v1810_v52 = vpack.c.bf16 %v1293_v46, %v1292_v40  ;;  %v1263_v53 = vmax.f32 %v1199_v47, 0.0  ;;  %v1295_v54 = vmax.f32 %v1231_v48, 0.0 }
 0x18e   : > { %1510 = vst [vmem:[%s2423_s24 + $0x30] sm:$0xff] %v1794_v51  ;;  %1526 = vst [vmem:[%s2423_s24 + $0xb0] sm:$0xff] %v1810_v52  ;;  %v1795_v55 = vpack.c.bf16 %v1263_v53, %v1262_v49  ;;  %v1811_v56 = vpack.c.bf16 %v1295_v54, %v1294_v50  ;;  %v858_v57 = vpop.f32.mrb[16].mxu0  ;;  %v938_v58 = vpop.f32.mrb[16].mxu1 }
 0x18f   : > { %v1200_v59 = vadd.f32 %v2409_v5, %v858_v57  ;;  %v1232_v60 = vadd.f32 %v2409_v5, %v938_v58  ;;  %v860_v61 = vpop.f32.mrb[17].mxu0  ;;  %v940_v62 = vpop.f32.mrb[17].mxu1 }
 0x190   : > { %1511 = vst [vmem:[%s2423_s24 + $0x38] sm:$0xff] %v1795_v55  ;;  %1527 = vst [vmem:[%s2423_s24 + $0xb8] sm:$0xff] %v1811_v56  ;;  %v1201_v63 = vadd.f32 %v2411_v6, %v860_v61  ;;  %v1233_v0 = vadd.f32 %v2411_v6, %v940_v62  ;;  %v862_v1 = vpop.f32.mrb[18].mxu0  ;;  %v942_v2 = vpop.f32.mrb[18].mxu1 }
 0x191   : > { %v1264_v3 = vmax.f32 %v1200_v59, 0.0  ;;  %v1296_v4 = vmax.f32 %v1232_v60, 0.0  ;;  %v1202_v7 = vadd.f32 %v2409_v5, %v862_v1  ;;  %v1234_v8 = vadd.f32 %v2409_v5, %v942_v2  ;;  %v864_v9 = vpop.f32.mrb[19].mxu0  ;;  %v944_v10 = vpop.f32.mrb[19].mxu1 }
 0x192   : > { %v1265_v11 = vmax.f32 %v1201_v63, 0.0  ;;  %v1297_v12 = vmax.f32 %v1233_v0, 0.0  ;;  %v1203_v13 = vadd.f32 %v2411_v6, %v864_v9  ;;  %v1235_v14 = vadd.f32 %v2411_v6, %v944_v10 }
 0x193   : > { %v1266_v15 = vmax.f32 %v1202_v7, 0.0  ;;  %v1298_v16 = vmax.f32 %v1234_v8, 0.0 }
 0x194   : > { %v1796_v17 = vpack.c.bf16 %v1265_v11, %v1264_v3  ;;  %v1812_v18 = vpack.c.bf16 %v1297_v12, %v1296_v4  ;;  %v1267_v19 = vmax.f32 %v1203_v13, 0.0  ;;  %v1299_v20 = vmax.f32 %v1235_v14, 0.0 }
 0x196   : > { %1512 = vst [vmem:[%s2423_s24 + $0x40] sm:$0xff] %v1796_v17  ;;  %1528 = vst [vmem:[%s2423_s24 + $0xc0] sm:$0xff] %v1812_v18  ;;  %v1797_v21 = vpack.c.bf16 %v1267_v19, %v1266_v15  ;;  %v1813_v22 = vpack.c.bf16 %v1299_v20, %v1298_v16  ;;  %v868_v23 = vpop.f32.mrb[20].mxu0  ;;  %v948_v24 = vpop.f32.mrb[20].mxu1 }
 0x197   : > { %v1204_v25 = vadd.f32 %v2409_v5, %v868_v23  ;;  %v1236_v26 = vadd.f32 %v2409_v5, %v948_v24  ;;  %v870_v27 = vpop.f32.mrb[21].mxu0  ;;  %v950_v28 = vpop.f32.mrb[21].mxu1 }
 0x198   : > { %1513 = vst [vmem:[%s2423_s24 + $0x48] sm:$0xff] %v1797_v21  ;;  %1529 = vst [vmem:[%s2423_s24 + $0xc8] sm:$0xff] %v1813_v22  ;;  %v1205_v29 = vadd.f32 %v2411_v6, %v870_v27  ;;  %v1237_v30 = vadd.f32 %v2411_v6, %v950_v28  ;;  %v872_v31 = vpop.f32.mrb[22].mxu0  ;;  %v952_v32 = vpop.f32.mrb[22].mxu1 }
 0x199   : > { %v1268_v33 = vmax.f32 %v1204_v25, 0.0  ;;  %v1300_v34 = vmax.f32 %v1236_v26, 0.0  ;;  %v1206_v35 = vadd.f32 %v2409_v5, %v872_v31  ;;  %v1238_v36 = vadd.f32 %v2409_v5, %v952_v32  ;;  %v874_v37 = vpop.f32.mrb[23].mxu0  ;;  %v954_v38 = vpop.f32.mrb[23].mxu1 }
 0x19a   : > { %v1269_v39 = vmax.f32 %v1205_v29, 0.0  ;;  %v1301_v40 = vmax.f32 %v1237_v30, 0.0  ;;  %v1207_v41 = vadd.f32 %v2411_v6, %v874_v37  ;;  %v1239_v42 = vadd.f32 %v2411_v6, %v954_v38 }
 0x19b   : > { %v1270_v43 = vmax.f32 %v1206_v35, 0.0  ;;  %v1302_v44 = vmax.f32 %v1238_v36, 0.0 }
 0x19c   : > { %v1798_v45 = vpack.c.bf16 %v1269_v39, %v1268_v33  ;;  %v1814_v46 = vpack.c.bf16 %v1301_v40, %v1300_v34  ;;  %v1271_v47 = vmax.f32 %v1207_v41, 0.0  ;;  %v1303_v48 = vmax.f32 %v1239_v42, 0.0 }
 0x19e   : > { %1514 = vst [vmem:[%s2423_s24 + $0x50] sm:$0xff] %v1798_v45  ;;  %1530 = vst [vmem:[%s2423_s24 + $0xd0] sm:$0xff] %v1814_v46  ;;  %v1799_v49 = vpack.c.bf16 %v1271_v47, %v1270_v43  ;;  %v1815_v50 = vpack.c.bf16 %v1303_v48, %v1302_v44  ;;  %v878_v51 = vpop.f32.mrb[24].mxu0  ;;  %v958_v52 = vpop.f32.mrb[24].mxu1 }
 0x19f   : > { %v1208_v53 = vadd.f32 %v2409_v5, %v878_v51  ;;  %v1240_v54 = vadd.f32 %v2409_v5, %v958_v52  ;;  %v880_v55 = vpop.f32.mrb[25].mxu0  ;;  %v960_v56 = vpop.f32.mrb[25].mxu1 }
 0x1a0   : > { %1515 = vst [vmem:[%s2423_s24 + $0x58] sm:$0xff] %v1799_v49  ;;  %1531 = vst [vmem:[%s2423_s24 + $0xd8] sm:$0xff] %v1815_v50  ;;  %v1209_v57 = vadd.f32 %v2411_v6, %v880_v55  ;;  %v1241_v58 = vadd.f32 %v2411_v6, %v960_v56  ;;  %v882_v59 = vpop.f32.mrb[26].mxu0  ;;  %v962_v60 = vpop.f32.mrb[26].mxu1 }
 0x1a1   : > { %v1272_v61 = vmax.f32 %v1208_v53, 0.0  ;;  %v1304_v62 = vmax.f32 %v1240_v54, 0.0  ;;  %v1210_v63 = vadd.f32 %v2409_v5, %v882_v59  ;;  %v1242_v0 = vadd.f32 %v2409_v5, %v962_v60  ;;  %v884_v1 = vpop.f32.mrb[27].mxu0  ;;  %v964_v2 = vpop.f32.mrb[27].mxu1 }
 0x1a2   : > { %v1273_v3 = vmax.f32 %v1209_v57, 0.0  ;;  %v1305_v4 = vmax.f32 %v1241_v58, 0.0  ;;  %v1211_v7 = vadd.f32 %v2411_v6, %v884_v1  ;;  %v1243_v8 = vadd.f32 %v2411_v6, %v964_v2 }
 0x1a3   : > { %v1274_v9 = vmax.f32 %v1210_v63, 0.0  ;;  %v1306_v10 = vmax.f32 %v1242_v0, 0.0 }
 0x1a4   : > { %v1800_v11 = vpack.c.bf16 %v1273_v3, %v1272_v61  ;;  %v1816_v12 = vpack.c.bf16 %v1305_v4, %v1304_v62  ;;  %v1275_v13 = vmax.f32 %v1211_v7, 0.0  ;;  %v1307_v14 = vmax.f32 %v1243_v8, 0.0 }
 0x1a6   : > { %1516 = vst [vmem:[%s2423_s24 + $0x60] sm:$0xff] %v1800_v11  ;;  %1532 = vst [vmem:[%s2423_s24 + $0xe0] sm:$0xff] %v1816_v12  ;;  %v1801_v15 = vpack.c.bf16 %v1275_v13, %v1274_v9  ;;  %v1817_v16 = vpack.c.bf16 %v1307_v14, %v1306_v10  ;;  %v888_v17 = vpop.f32.mrb[28].mxu0  ;;  %v968_v18 = vpop.f32.mrb[28].mxu1 }
 0x1a7   : > { %v1212_v19 = vadd.f32 %v2409_v5, %v888_v17  ;;  %v1244_v20 = vadd.f32 %v2409_v5, %v968_v18  ;;  %v890_v21 = vpop.f32.mrb[29].mxu0  ;;  %v970_v22 = vpop.f32.mrb[29].mxu1 }
 0x1a8   : > { %1517 = vst [vmem:[%s2423_s24 + $0x68] sm:$0xff] %v1801_v15  ;;  %1533 = vst [vmem:[%s2423_s24 + $0xe8] sm:$0xff] %v1817_v16  ;;  %v1213_v23 = vadd.f32 %v2411_v6, %v890_v21  ;;  %v1245_v24 = vadd.f32 %v2411_v6, %v970_v22  ;;  %v892_v25 = vpop.f32.mrb[30].mxu0  ;;  %v972_v26 = vpop.f32.mrb[30].mxu1 }
 0x1a9   : > { %v1276_v27 = vmax.f32 %v1212_v19, 0.0  ;;  %v1308_v28 = vmax.f32 %v1244_v20, 0.0  ;;  %v1214_v29 = vadd.f32 %v2409_v5, %v892_v25  ;;  %v1246_v30 = vadd.f32 %v2409_v5, %v972_v26  ;;  %v894_v31 = vpop.f32.mrb[31].mxu0  ;;  %v974_v32 = vpop.f32.mrb[31].mxu1 }
 0x1aa   : > { %v1277_v33 = vmax.f32 %v1213_v23, 0.0  ;;  %v1309_v34 = vmax.f32 %v1245_v24, 0.0  ;;  %v1215_v35 = vadd.f32 %v2411_v6, %v894_v31  ;;  %v1247_v36 = vadd.f32 %v2411_v6, %v974_v32 }
 0x1ab   : > { %v1278_v37 = vmax.f32 %v1214_v29, 0.0  ;;  %v1310_v38 = vmax.f32 %v1246_v30, 0.0 }
 0x1ac   : > { %v1802_v39 = vpack.c.bf16 %v1277_v33, %v1276_v27  ;;  %v1818_v5 = vpack.c.bf16 %v1309_v34, %v1308_v28  ;;  %v1279_v40 = vmax.f32 %v1215_v35, 0.0  ;;  %v1311_v41 = vmax.f32 %v1247_v36, 0.0 }
 0x1ae   : > { %1518 = vst [vmem:[%s2423_s24 + $0x70] sm:$0xff] %v1802_v39  ;;  %1534 = vst [vmem:[%s2423_s24 + $0xf0] sm:$0xff] %v1818_v5  ;;  %v1803_v6 = vpack.c.bf16 %v1279_v40, %v1278_v37  ;;  %v1819_v42 = vpack.c.bf16 %v1311_v41, %v1310_v38 }
 0x1b0   : > { %1519 = vst [vmem:[%s2423_s24 + $0x78] sm:$0xff] %v1803_v6  ;;  %1535 = vst [vmem:[%s2423_s24 + $0xf8] sm:$0xff] %v1819_v42 }
 0x1b1   : > { %2098 = shalt.err (!%p2095_p5)
}
 0x1b2   : > { %s2099_s6 = scalar_lea.hbm %s2514_s25, 4096  ;;  %s2103_s19 = scalar_lea.hbm %s2572_s3, 8192 }
 0x1b3   : > { %p2100_p9 = scmp.ne.s32.totalorder %s2514_s25, %s2099_s6  ;;  %p2104_p3 = scmp.lt.u32.totalorder %s2514_s25, %s2572_s3 }
 0x1b4   : > { %p2105_p7 = scmp.lt.u32.totalorder %s2103_s19, %s2099_s6  ;;  %p2107_p4 = scmp.lt.u32.totalorder %s2099_s6, %s2514_s25 }
 0x1b5   : > { %p2101_p1 = pnand %p2100_p9, %p2299_p10 }
 0x1b6   : > { %p2106_p13 = por %p2105_p7, %p2104_p3 }
 0x1b7   : > { %p2102_p2 = pneg %p2101_p1 }
 0x1b8   : > { %p2108_p6 = por %p2107_p4, %p2106_p13 }
 0x1ba   : > { %p2109_p8 = pnand %p2108_p6, %p2102_p2 }
 0x1bc   : > { %2112 = shalt.err (!%p2109_p8)
}
 0x1bd   : > { %s2178_s24 = smov 128   ;;  %s2179_s10 = smov 8  }
 0x1be   : > { %1860 = dma.vmem_to_hbm [thread:$0]  (%p2299_p10), %s2516_s11, 4096, %s2514_s25, %s1537_s15, %s2178_s24, %s2178_s24, %s2179_s10  }
 0x1bf PF: > { %s1568_s9 = sand.u32 1, %s2151_s12   ;;  %p2590_p12 = scmp.ne.s32.totalorder %s2580_s23, 0 }
 0x1c0   : > { %p2591_p11 = scmp.ge.s32.totalorder %s2171_s17, 2  ;;  %s1569_s18 = scalar_lea.sflag [#allocation5], %s1568_s9 }
 0x1c2   : > { %p1871_p0 = pnand %p2591_p11, %p2590_p12 }
 0x1c4   : > { %2146 = dma.done.wait (!%p1871_p0), %s1569_s18, 4096  }
 0x1c5   : > { %2148 = vsyncadd (!%p1871_p0), %s1569_s18, 4294963200  ;;  %s20_s17 = sadd.s32 1, %s2171_s17   ;;  %s2592_s12 = smov %s2155_s13 }
 0x1c6   : > { %p17_p5 = scmp.ge.s32.totalorder %s20_s17, 4   ;;  %s2593_s13 = smov %s2159_s14 }
 0x1c7   : > { %s2594_s14 = smov %s2308_s5  ;;  %s2595_s15 = smov %s2167_s16 }
 0x1c8   : > { %s2596_s16 = smov %s2598_s28  ;;  %19 = sbr.rel (!%p17_p5) target bundleno = 7 (0x7), region = 93 }
 0x1cf   :  { %1574 = vsyncpa [#allocation4], 1 }
 0x1d0   :  { %1576 = vsyncpa [#allocation4 + $0x1], 1 }
 0x1d1   :  { %1577 = vsyncpa [#allocation7], 1 }
 0x1d2   :  { %1578 = vsyncpa [#allocation5], 1 }
 0x1d3   :  { %1580 = vsyncpa [#allocation5 + $0x1], 1 }

</bundles_post_ra>
